<compile_context>
chip_gen: v7x
topology: tpu7x:2x2x1
jax: 0.10.0
libtpu: 0.0.40
codegen_flags: <defaults>
</compile_context>

<pallas_src>
import jax
import jax.numpy as jnp
from jax.experimental import pallas as pl
from jax.experimental.pallas import tpu as pltpu

IN_FEATURES = 10
OUT_FEATURES = 5

# (TB, 10) / (TB, 5) f32 blocks lane-pad to (TB, 128) in VMEM -> TB*512 B each.
# TB=8192: ~16 MiB double-buffered in+out, fits the 32 MiB limit below on all
# of v5e / v6e / v7x while amortizing the ~0.35 us per-grid-step overhead.
DEFAULT_BATCH_TILE = 8192
_VMEM_LIMIT_BYTES = 32 * 1024 * 1024


def linear_relu_kernel(x_ref, w_ref, b_ref, o_ref):
    # x_ref: (TB, IN); w_ref: (IN, OUT); b_ref: (1, OUT); o_ref: (TB, OUT)
    y = jnp.dot(x_ref[...], w_ref[...], preferred_element_type=jnp.float32)
    y = y + b_ref[...]
    o_ref[...] = jnp.maximum(y, 0.0).astype(o_ref.dtype)


def prepare_params(weight, bias):
    """One-time parameter prep (hoisted out of the per-call path).

    weight: (OUT, IN) PyTorch layout -> W^T (IN, OUT) so the kernel runs x @ W^T.
    bias:   (OUT,)                   -> (1, OUT) row, broadcast along batch.
    """
    return weight.T, bias.reshape(1, OUT_FEATURES)


def _choose_tile(B, tb):
    """Pick the batch tile. B and tb are static Python ints at trace time."""
    if B <= tb:
        return B  # small-B fast path: single full block, no edge handling
    # >= 2 grid steps so the "parallel" batch axis shards across both v7x TCs.
    half = ((pl.cdiv(B, 2) + 7) // 8) * 8  # multiple of 8 (sublane constraint)
    return min(tb, half)


def _forward(x, wT, b_row, *, tb=DEFAULT_BATCH_TILE):
    """x: (B, IN) f32; wT: (IN, OUT) f32; b_row: (1, OUT) f32 -> (B, OUT) f32."""
    B = x.shape[0]
    TB = _choose_tile(B, tb)
    grid = (pl.cdiv(B, TB),)  # partial edge block is masked by Pallas

    return pl.pallas_call(
        linear_relu_kernel,
        out_shape=jax.ShapeDtypeStruct((B, OUT_FEATURES), x.dtype),
        grid_spec=pl.GridSpec(
            grid=grid,
            in_specs=[
                pl.BlockSpec((TB, IN_FEATURES), lambda i: (i, 0)),
                pl.BlockSpec((IN_FEATURES, OUT_FEATURES), lambda i: (0, 0)),
                pl.BlockSpec((1, OUT_FEATURES), lambda i: (0, 0)),
            ],
            out_specs=pl.BlockSpec((TB, OUT_FEATURES), lambda i: (i, 0)),
        ),
        compiler_params=pltpu.CompilerParams(
            dimension_semantics=("parallel",),   # independent batch tiles
            vmem_limit_bytes=_VMEM_LIMIT_BYTES,  # v5e default scoped is 16 MiB
        ),
    )(x, wT, b_row)


base_model_forward = jax.jit(_forward, static_argnames=("tb",))


if __name__ == "__main__":
    key = jax.random.PRNGKey(0)
    kw, kb, kx = jax.random.split(key, 3)

    # Deterministic parameter init (shapes from nn.Linear(10, 5)).
    bound = 1.0 / (IN_FEATURES ** 0.5)
    weight = jax.random.uniform(kw, (OUT_FEATURES, IN_FEATURES),
                                minval=-bound, maxval=bound, dtype=jnp.float32)
    bias = jax.random.uniform(kb, (OUT_FEATURES,),
                              minval=-bound, maxval=bound, dtype=jnp.float32)
    wT, b_row = prepare_params(weight, bias)

    # Exercise all paths:
    #   B=8     : small-B single-block fast path
    #   B=600   : multi-tile grid (tb=256) with a partial (masked) edge block
    #   B=20000 : default TB=8192, multi-step grid + partial edge block
    cases = [(8, DEFAULT_BATCH_TILE), (600, 256), (20000, DEFAULT_BATCH_TILE)]
    for B, tb in cases:
        x = jax.random.normal(kx, (B, IN_FEATURES), dtype=jnp.float32)
        out = jax.block_until_ready(base_model_forward(x, wT, b_row, tb=tb))

        ref = jnp.maximum(x @ weight.T + bias, 0.0)
        assert out.shape == (B, OUT_FEATURES)
        assert jnp.allclose(out, ref, atol=1e-5, rtol=1e-5), f"mismatch at B={B}"

    print("KERNEL_OK")
</pallas_src>

<mosaic_0001>
module attributes {stable_mosaic.version = 11 : i64} {
  func.func @linear_relu_kernel(%arg0: i32, %arg1: memref<8x10xf32, #tpu.memory_space<vmem>>, %arg2: memref<10x5xf32, #tpu.memory_space<vmem>>, %arg3: memref<1x5xf32, #tpu.memory_space<vmem>>, %arg4: memref<8x5xf32, #tpu.memory_space<vmem>>) attributes {dimension_semantics = [#tpu.dimension_semantics<parallel>], iteration_bounds = array<i64: 1>, scalar_prefetch = 0 : i64, scratch_operands = 0 : i64, tpu.core_type = #tpu.core_type<tc>, window_params = [{transform_indices = @transform_0, window_bounds = array<i64: 8, 10>}, {pipeline_mode = #tpu.pipeline_mode<synchronous>, transform_indices = @transform_1, window_bounds = array<i64: 10, 5>}, {pipeline_mode = #tpu.pipeline_mode<synchronous>, transform_indices = @transform_2, window_bounds = array<i64: 1, 5>}, {transform_indices = @transform_3, window_bounds = array<i64: 8, 5>}]} {
    %c0 = arith.constant 0 : index
    %c0_0 = arith.constant 0 : index
    %0 = vector.load %arg1[%c0, %c0_0] : memref<8x10xf32, #tpu.memory_space<vmem>>, vector<8x10xf32>
    %c0_1 = arith.constant 0 : index
    %c0_2 = arith.constant 0 : index
    %1 = vector.load %arg2[%c0_1, %c0_2] : memref<10x5xf32, #tpu.memory_space<vmem>>, vector<10x5xf32>
    %cst = arith.constant dense<0.000000e+00> : vector<8x5xf32>
    %2 = tpu.matmul %0, %1, %cst {dimension_numbers = #tpu.dot_dimension_numbers<[1], [0], [0], [1], [0, 0, 1, 1], [], []>} : vector<8x10xf32>, vector<10x5xf32>, vector<8x5xf32> -> vector<8x5xf32>
    %c0_3 = arith.constant 0 : index
    %c0_4 = arith.constant 0 : index
    %3 = vector.load %arg3[%c0_3, %c0_4] : memref<1x5xf32, #tpu.memory_space<vmem>>, vector<1x5xf32>
    %4 = vector.broadcast %3 : vector<1x5xf32> to vector<8x5xf32>
    %5 = arith.addf %2, %4 : vector<8x5xf32>
    %cst_5 = arith.constant 0.000000e+00 : f32
    %6 = vector.broadcast %cst_5 : f32 to vector<8x5xf32>
    %7 = arith.maximumf %5, %6 : vector<8x5xf32>
    %c0_6 = arith.constant 0 : index
    %c0_7 = arith.constant 0 : index
    %8 = vector.load %arg4[%c0_6, %c0_7] : memref<8x5xf32, #tpu.memory_space<vmem>>, vector<8x5xf32>
    tpu.vector_store %arg4[%c0_6, %c0_7], %7 {strides = array<i32>} : memref<8x5xf32, #tpu.memory_space<vmem>>, vector<8x5xf32>,
    return
  }
  func.func @transform_0(%arg0: i32) -> (i32, i32) {
    %c0_i32 = arith.constant 0 : i32
    %c0_i32_0 = arith.constant 0 : i32
    return %arg0, %c0_i32 : i32, i32
  }
  func.func @transform_1(%arg0: i32) -> (i32, i32) {
    %c0_i32 = arith.constant 0 : i32
    %c0_i32_0 = arith.constant 0 : i32
    %c0_i32_1 = arith.constant 0 : i32
    return %c0_i32, %c0_i32_0 : i32, i32
  }
  func.func @transform_2(%arg0: i32) -> (i32, i32) {
    %c0_i32 = arith.constant 0 : i32
    %c0_i32_0 = arith.constant 0 : i32
    %c0_i32_1 = arith.constant 0 : i32
    return %c0_i32, %c0_i32_0 : i32, i32
  }
  func.func @transform_3(%arg0: i32) -> (i32, i32) {
    %c0_i32 = arith.constant 0 : i32
    %c0_i32_0 = arith.constant 0 : i32
    return %arg0, %c0_i32 : i32, i32
  }
}

</mosaic_0001>

<bundles_post_ra>
// kernel: _forward.1
= control target key start
LH: loop header
LB: loop body
LE: loop exit
PB: predicated region body
PF: predicated region fallthrough
CT: control target
= control target key end

     0   :  { %vm29_vm0 = vcmask 1041408   ;;  %v166_v2 = vmov 0.0|0.0   ;;  %vm167_vm1 = vmmov 1   ;;  %vm168_vm3 = vmmov 0   ;;  %s215_s0 = inlined_call_operand.vmem [shape: f32[8,10], index: 0, kind: input, shape index: {}]   ;;  %s216_s1 = inlined_call_operand.vmem [shape: f32[10,5], index: 1, kind: input, shape index: {}]   ;;  %s217_s2 = inlined_call_operand.vmem [shape: f32[1,5], index: 2, kind: input, shape index: {}]   ;;  %s218_s3 = inlined_call_operand.hbm [shape: f32[8,5], index: 3, kind: output, shape index: {}]  }
   0x1   :  { %v16_v0 = vld [vmem:[%s216_s1] sm:$0xff]  ;;  %v17_v1 = vld [vmem:[%s216_s1 + $0x8] sm:$0x3]  ;;  %133 = vmatprep.subr.bf16.mxu0 %v166_v2  ;;  %vm135_vm2 = vmpackc.low %vm29_vm0, %vm167_vm1  ;;  %v169_v4 = vmov 0.0  }
   0x2   :  { %v134_v3 = vpack.c.bf16 %v17_v1, %v16_v0  ;;  %130 = vmatprep.mubr.msk.f32.mxu0 %vm168_vm3, %v169_v4 }
   0x3   :  { %8 = vsyncpa [#allocation3], 0  ;;  %v15_v5 = vld [vmem:[%s215_s0] sm:$0xff]  ;;  %vm25_vm4 = vcmask 80896   ;;  %s170_s1 = smov [#allocation2]   ;;  %vm104_vm5 = vcmask 39936  }
   0x4   :  { %136 = vmatpush3.bf16.msk.msra.mxu0 %vm135_vm2, %v134_v3  ;;  %v120_v6 = vld [vmem:[%s217_s2] ss:$0 sm:$0xff]  ;;  %s112_s20 = sshll.u32 %s170_s1, 4  ;;  %s113_s20 = int_to_ptr.vmem [resolvable:$true] %s112_s20 }
   0x5   :  { %s142_s21 = scalar_lea.vmem %s113_s20, 128  ;;  %p147_p1 = scmp.lt.s32.totalorder %s113_s20, %s113_s20 }
   0x6   :  { %p143_p0 = scmp.ne.s32.totalorder %s113_s20, %s142_s21  ;;  %p148_p2 = scmp.lt.s32.totalorder %s142_s21, %s142_s21 }
   0x7   :  { %131 = vmatmul.mubr.msk.f32.vlgmr.msra.gmra.mrb[0].mxu0 %vm25_vm4, %v15_v5 }
   0x8   :  { %p149_p3 = por %p148_p2, %p147_p1 }
   0xa   :  { %p150_p4 = pnand %p149_p3, %p143_p0 }
  0xda   :  { %v99_v7 = vpop.f32.mrb[0].mxu0 }
  0xdb   :  { %v100_v8 = vadd.f32 %v120_v6, %v99_v7  ;;  %v132_v9 = vpop.f32.mrb[1].mxu0 }
  0xdd   :  { %v103_v10 = vmax.f32 %v100_v8, 0.0 }
  0xdf   :  { %105 = vst.msk [vmem:[#allocation2] sm:$0xff] %vm104_vm5, %v103_v10 }
  0xe0   :  { %153 = shalt.err (!%p150_p4)
}
  0xe1   :  { %s154_s2 = scalar_lea.hbm %s218_s3, 128 }
  0xe2   :  { %p155_p5 = scmp.ne.s32.totalorder %s218_s3, %s154_s2  ;;  %p158_p6 = scmp.lt.u32.totalorder %s154_s2, %s218_s3 }
  0xe4   :  { %p160_p7 = pnand %p158_p6, %p155_p5 }
  0xe6   :  { %163 = shalt.err (!%p160_p7)
}
  0xe7   :  { %115 = dma.vmem_to_hbm [thread:$0]  %s113_s20, 128, %s218_s3, [#allocation3]  }
  0xe8   :  { %164 = dma.done.wait [#allocation3], 128  }
  0xe9   :  { %165 = vsyncadd [#allocation3], 4294967168 }
  0xea   :  { %119 = vsyncpa [#allocation3], 1 }

</bundles_post_ra>
